<compile_context>
chip_gen: v6e
topology: v6e:2x2x1
jax: 0.10.0
libtpu: 0.0.40
codegen_flags: <defaults>
</compile_context>

<pallas_src>
import math
import functools

import jax
import jax.numpy as jnp
from jax import lax
from jax.experimental import pallas as pl
from jax.experimental.pallas import tpu as pltpu

_LANES = 128
_F32_SUBLANES = 8


def _round_up(x, m):
    return ((x + m - 1) // m) * m


# ----------------------------------------------------------------------------
# Kernel
# ----------------------------------------------------------------------------
def _project(x, w_ref, b_ref):
    """x: (bb, S, D) f32  ->  x @ W + b : (bb, S, N) f32.  W is bf16, b f32."""
    bb, S, D = x.shape
    N = w_ref.shape[1]
    if S % _F32_SUBLANES == 0:
        # Collapsing (bb, S) is layout-free when S fills whole f32 sublane
        # tiles, so the MXU sees one tall (bb*S, D) matmul.
        r = jnp.dot(x.reshape(bb * S, D).astype(jnp.bfloat16), w_ref[...],
                    preferred_element_type=jnp.float32).reshape(bb, S, N)
    else:
        # Non-sublane-aligned S: skip the flatten (it would force a VMEM
        # repack copy) and run per-batch 2D matmuls instead.
        r = jnp.stack(
            [jnp.dot(x[i].astype(jnp.bfloat16), w_ref[...],
                     preferred_element_type=jnp.float32) for i in range(bb)],
            axis=0)
    return r + b_ref[...]


def _cross_sdpa_kernel(z_ref, y_ref, wq_ref, bq_ref, wkv_ref, bkv_ref, o_ref,
                       *, kq_pad):
    out_dim = o_ref.shape[-1]

    z = z_ref[...]                                   # (bb, S_enc, enc_dim) f32
    y = y_ref[...]                                   # (bb, S_dec, dec_dim) f32

    # Projections on the MXU (bf16 operands, f32 accumulation, f32 bias).
    # The 1/sqrt(kq_dim) scale is already folded into wq/bq.
    q3 = _project(y, wq_ref, bq_ref)                 # (bb, S_dec, kq_pad)
    kv3 = _project(z, wkv_ref, bkv_ref)              # (bb, S_enc, kq_pad+out_dim)

    k3 = kv3[:, :, :kq_pad]                          # lane-tile-aligned slice
    v3 = kv3[:, :, kq_pad:kq_pad + out_dim]

    # Scaled scores (scale pre-folded): batched contraction over the feature
    # axis — no materialized K^T / XLU transpose.  Zero-padded q/k feature
    # lanes contract to zero, so the math is unchanged.
    s = lax.dot_general(
        q3.astype(jnp.bfloat16), k3.astype(jnp.bfloat16),
        dimension_numbers=(((2,), (2,)), ((0,), (0,))),
        preferred_element_type=jnp.float32)          # (bb, S_dec, S_enc)

    # Numerically-stable softmax over the encoder axis, in f32.
    s = s - jnp.max(s, axis=-1, keepdims=True)
    p = jnp.exp(s)
    p = p * pl.reciprocal(jnp.sum(p, axis=-1, keepdims=True), approx=True)

    # attn @ V, batched.  Output is stored unpadded (out_dim lanes).
    o = lax.dot_general(
        p.astype(jnp.bfloat16), v3.astype(jnp.bfloat16),
        dimension_numbers=(((2,), (1,)), ((0,), (0,))),
        preferred_element_type=jnp.float32)          # (bb, S_dec, out_dim)
    o_ref[...] = o.astype(o_ref.dtype)


# ----------------------------------------------------------------------------
# One-time parameter preparation (pad, fuse K|V, fold scale, bf16-cast).
# ----------------------------------------------------------------------------
def prepare_cross_sdpa_params(wq, bq, wk, bk, wv, bv, *, kq_dimension):
    dec_dim, kq_dim = wq.shape
    enc_dim, out_dim = wv.shape
    assert wk.shape == (enc_dim, kq_dim)
    assert kq_dim == kq_dimension

    kq_pad = _round_up(kq_dim, _LANES)
    kv_w = kq_pad + out_dim
    scale = 1.0 / math.sqrt(kq_dimension)
    f32 = jnp.float32

    # Fold the attention scale into the Q projection (mathematically identical:
    # (y @ (wq*s) + bq*s) @ K^T == s * (Q @ K^T)).  Pad kq to a 128-lane
    # multiple so the K slice of the fused K|V projection is lane-tile aligned.
    wq_p = jnp.zeros((dec_dim, kq_pad), f32).at[:, :kq_dim].set(wq * scale)
    bq_p = jnp.zeros((1, kq_pad), f32).at[:, :kq_dim].set((bq * scale).reshape(1, -1))
    wkv_p = (jnp.zeros((enc_dim, kv_w), f32)
             .at[:, :kq_dim].set(wk)
             .at[:, kq_pad:].set(wv))
    bkv_p = (jnp.zeros((1, kv_w), f32)
             .at[:, :kq_dim].set(bk.reshape(1, -1))
             .at[:, kq_pad:].set(bv.reshape(1, -1)))

    return dict(
        wq=wq_p.astype(jnp.bfloat16), bq=bq_p,          # biases stay f32
        wkv=wkv_p.astype(jnp.bfloat16), bkv=bkv_p,
        kq_pad=kq_pad, kv_w=kv_w, out_dim=out_dim,
        enc_dim=enc_dim, dec_dim=dec_dim,
    )


# ----------------------------------------------------------------------------
# Generation-aware sizing
# ----------------------------------------------------------------------------
def _tpu_vmem_info():
    """Return (per-core VMEM bytes, likely-2-TensorCore chip?)."""
    try:
        vmem = int(pltpu.get_tpu_info().vmem_capacity_bytes)
    except Exception:
        vmem = 64 * 1024 * 1024          # conservative (v7x-sized) fallback
    # v7x exposes 64 MiB VMEM per TensorCore and has 2 TCs per chip;
    # v5e/v6e have 128 MiB and a single TensorCore.
    multi_core = vmem <= 64 * 1024 * 1024
    return vmem, multi_core


def _pick_block_b(B, S_enc, S_dec, enc_dim, dec_dim, kq_pad, kv_w, out_dim,
                  vmem_budget, multi_core):
    """Largest divisor of B whose per-step footprint fits the VMEM budget."""
    f32, bf16 = 4, 2

    def per_step_bytes(bb):
        io = 2 * bb * (S_enc * enc_dim + S_dec * dec_dim
                       + S_dec * out_dim) * f32           # double-buffered I/O
        weights = (dec_dim * kq_pad + enc_dim * kv_w) * bf16 \
            + (kq_pad + kv_w) * f32                        # single-buffered
        live = bb * (S_dec * kq_pad + S_enc * kv_w
                     + 2 * S_dec * S_enc + S_dec * out_dim) * f32
        live += bb * (S_dec * dec_dim + S_enc * enc_dim + S_dec * kq_pad
                      + S_enc * kq_pad + S_dec * S_enc + S_enc * out_dim) * bf16
        return io + weights + live

    # On 2-TensorCore chips keep >= 2 grid steps so the "parallel" batch axis
    # actually feeds both cores; on single-core chips let block_b grow to B.
    max_bb = B // 2 if (multi_core and B >= 2) else B
    best = 1
    for d in range(1, B + 1):
        if B % d == 0 and d <= max_bb and per_step_bytes(d) <= vmem_budget:
            best = d
    return best


# ----------------------------------------------------------------------------
# Forward wrapper
# ----------------------------------------------------------------------------
def cross_sdpa(params, z, y, *, block_b=None):
    """z: (B, S_enc, enc_dim) f32, y: (B, S_dec, dec_dim) f32 -> (B, S_dec, out_dim) f32."""
    B, S_enc, enc_dim = z.shape
    By, S_dec, dec_dim = y.shape
    assert By == B
    assert enc_dim == params["enc_dim"] and dec_dim == params["dec_dim"]
    kq_pad, kv_w, out_dim = params["kq_pad"], params["kv_w"], params["out_dim"]

    vmem_cap, multi_core = _tpu_vmem_info()
    vmem_budget = int(vmem_cap * 3 // 4)     # ~48 MiB on v7x, ~96 MiB on v5e/v6e

    if block_b is None:
        block_b = _pick_block_b(B, S_enc, S_dec, enc_dim, dec_dim, kq_pad,
                                kv_w, out_dim, vmem_budget, multi_core)
    assert B % block_b == 0
    grid = (B // block_b,)

    kernel = functools.partial(_cross_sdpa_kernel, kq_pad=kq_pad)

    # Advisory cost estimate so XLA schedules neighbours sensibly.
    flops = 2 * B * (S_dec * dec_dim * kq_pad
                     + S_enc * enc_dim * kv_w
                     + S_dec * S_enc * kq_pad
                     + S_dec * S_enc * out_dim)
    bytes_accessed = int(z.size * 4 + y.size * 4
                         + params["wq"].size * 2 + params["wkv"].size * 2
                         + params["bq"].size * 4 + params["bkv"].size * 4
                         + B * S_dec * out_dim * 4)
    cost = pl.CostEstimate(flops=int(flops),
                           transcendentals=int(B * S_dec * S_enc),
                           bytes_accessed=bytes_accessed)

    def run(single_buffer_weights):
        def const_spec(shape):
            idx_map = lambda b, _shape=shape: (0,) * len(_shape)
            if single_buffer_weights:
                # Grid-invariant block: one VMEM buffer is enough; the default
                # double-buffering would only double its footprint.
                return pl.BlockSpec(shape, idx_map, pipeline_mode=pl.Buffered(1))
            return pl.BlockSpec(shape, idx_map)

        in_specs = [
            pl.BlockSpec((block_b, S_enc, enc_dim), lambda b: (b, 0, 0)),   # z (f32)
            pl.BlockSpec((block_b, S_dec, dec_dim), lambda b: (b, 0, 0)),   # y (f32)
            const_spec((dec_dim, kq_pad)),                                  # wq (bf16)
            const_spec((1, kq_pad)),                                        # bq (f32)
            const_spec((enc_dim, kv_w)),                                    # wk|wv (bf16)
            const_spec((1, kv_w)),                                          # bk|bv (f32)
        ]
        out_specs = pl.BlockSpec((block_b, S_dec, out_dim), lambda b: (b, 0, 0))

        return pl.pallas_call(
            kernel,
            out_shape=jax.ShapeDtypeStruct((B, S_dec, out_dim), jnp.float32),
            grid_spec=pltpu.PrefetchScalarGridSpec(
                num_scalar_prefetch=0,
                grid=grid,
                in_specs=in_specs,
                out_specs=out_specs,
            ),
            compiler_params=pltpu.CompilerParams(
                dimension_semantics=("parallel",),
                vmem_limit_bytes=vmem_budget,
            ),
            cost_estimate=cost,
        )(z, y, params["wq"], params["bq"], params["wkv"], params["bkv"])

    try:
        return run(single_buffer_weights=True)
    except Exception:
        # Older jax without BlockSpec(pipeline_mode=pl.Buffered(1)) support:
        # fall back to default double-buffered weight blocks.
        return run(single_buffer_weights=False)


# ----------------------------------------------------------------------------
# Pure-JAX reference + self-test
# ----------------------------------------------------------------------------
def _reference(z, y, wq, bq, wk, bk, wv, bv, kq_dimension):
    q = jnp.einsum("bsd,dk->bsk", y, wq) + bq
    k = jnp.einsum("bsd,dk->bsk", z, wk) + bk
    v = jnp.einsum("bsd,do->bso", z, wv) + bv
    s = jnp.einsum("bqk,bsk->bqs", q, k) / math.sqrt(kq_dimension)
    p = jax.nn.softmax(s, axis=-1)
    return jnp.einsum("bqs,bso->bqo", p, v)


if __name__ == "__main__":
    # Small shapes consistent with the module's forward.
    B = 2
    S_enc, S_dec = 8, 8
    enc_inp_dim, dec_inp_dim = 32, 32
    kq_dimension, out_dimension = 16, 32

    key = jax.random.PRNGKey(0)
    k_z, k_y, k_wq, k_bq, k_wk, k_bk, k_wv, k_bv = jax.random.split(key, 8)

    z = jax.random.normal(k_z, (B, S_enc, enc_inp_dim), dtype=jnp.float32)
    y = jax.random.normal(k_y, (B, S_dec, dec_inp_dim), dtype=jnp.float32)

    # Deterministic init mimicking nn.Linear's uniform(-1/sqrt(in), 1/sqrt(in)),
    # stored as (in_features, out_features).
    def linear_init(kw, kb, fan_in, fan_out):
        bound = 1.0 / math.sqrt(fan_in)
        w = jax.random.uniform(kw, (fan_in, fan_out), jnp.float32, -bound, bound)
        b = jax.random.uniform(kb, (fan_out,), jnp.float32, -bound, bound)
        return w, b

    wq, bq = linear_init(k_wq, k_bq, dec_inp_dim, kq_dimension)
    wk, bk = linear_init(k_wk, k_bk, enc_inp_dim, kq_dimension)
    wv, bv = linear_init(k_wv, k_bv, enc_inp_dim, out_dimension)

    # One-time parameter prep (pad / fuse / fold scale / bf16 cast).
    params = prepare_cross_sdpa_params(wq, bq, wk, bk, wv, bv,
                                       kq_dimension=kq_dimension)

    out = cross_sdpa(params, z, y)
    out = jax.block_until_ready(out)

    ref = _reference(z, y, wq, bq, wk, bk, wv, bv, kq_dimension)
    assert out.shape == (B, S_dec, out_dimension)
    # bf16 matmul operands (f32 accumulation) + approx reciprocal -> loosened
    # tolerance vs. the pure-f32 reference.
    assert jnp.allclose(out, ref, atol=5e-2, rtol=5e-2), "mismatch vs reference"

    print("KERNEL_OK")
</pallas_src>

<mosaic_0001>
module attributes {stable_mosaic.version = 11 : i64} {
  func.func @_cross_sdpa_kernel(%arg0: i32, %arg1: memref<1x8x32xf32, #tpu.memory_space<vmem>>, %arg2: memref<1x8x32xf32, #tpu.memory_space<vmem>>, %arg3: memref<32x128xbf16, #tpu.memory_space<vmem>>, %arg4: memref<1x128xf32, #tpu.memory_space<vmem>>, %arg5: memref<32x160xbf16, #tpu.memory_space<vmem>>, %arg6: memref<1x160xf32, #tpu.memory_space<vmem>>, %arg7: memref<1x8x32xf32, #tpu.memory_space<vmem>>) attributes {dimension_semantics = [#tpu.dimension_semantics<parallel>], iteration_bounds = array<i64: 2>, scalar_prefetch = 0 : i64, scratch_operands = 0 : i64, tpu.core_type = #tpu.core_type<tc>, window_params = [{transform_indices = @transform_0, window_bounds = array<i64: 1, 8, 32>}, {transform_indices = @transform_1, window_bounds = array<i64: 1, 8, 32>}, {pipeline_mode = #tpu.pipeline_mode<synchronous>, transform_indices = @transform_2, window_bounds = array<i64: 32, 128>}, {pipeline_mode = #tpu.pipeline_mode<synchronous>, transform_indices = @transform_3, window_bounds = array<i64: 1, 128>}, {pipeline_mode = #tpu.pipeline_mode<synchronous>, transform_indices = @transform_4, window_bounds = array<i64: 32, 160>}, {pipeline_mode = #tpu.pipeline_mode<synchronous>, transform_indices = @transform_5, window_bounds = array<i64: 1, 160>}, {transform_indices = @transform_6, window_bounds = array<i64: 1, 8, 32>}]} {
    %c0 = arith.constant 0 : index
    %c0_0 = arith.constant 0 : index
    %c0_1 = arith.constant 0 : index
    %0 = vector.load %arg1[%c0, %c0_0, %c0_1] : memref<1x8x32xf32, #tpu.memory_space<vmem>>, vector<1x8x32xf32>
    %c0_2 = arith.constant 0 : index
    %c0_3 = arith.constant 0 : index
    %c0_4 = arith.constant 0 : index
    %1 = vector.load %arg2[%c0_2, %c0_3, %c0_4] : memref<1x8x32xf32, #tpu.memory_space<vmem>>, vector<1x8x32xf32>
    %2 = vector.shape_cast %1 : vector<1x8x32xf32> to vector<8x32xf32>
    %3 = arith.truncf %2 : vector<8x32xf32> to vector<8x32xbf16>
    %c0_5 = arith.constant 0 : index
    %c0_6 = arith.constant 0 : index
    %4 = vector.load %arg3[%c0_5, %c0_6] : memref<32x128xbf16, #tpu.memory_space<vmem>>, vector<32x128xbf16>
    %cst = arith.constant dense<0.000000e+00> : vector<8x128xf32>
    %5 = tpu.matmul %3, %4, %cst {dimension_numbers = #tpu.dot_dimension_numbers<[1], [0], [0], [1], [0, 0, 1, 1], [], []>} : vector<8x32xbf16>, vector<32x128xbf16>, vector<8x128xf32> -> vector<8x128xf32>
    %6 = vector.shape_cast %5 : vector<8x128xf32> to vector<1x8x128xf32>
    %c0_7 = arith.constant 0 : index
    %c0_8 = arith.constant 0 : index
    %7 = vector.load %arg4[%c0_7, %c0_8] : memref<1x128xf32, #tpu.memory_space<vmem>>, vector<1x128xf32>
    %8 = vector.shape_cast %7 : vector<1x128xf32> to vector<1x1x128xf32>
    %9 = vector.broadcast %8 : vector<1x1x128xf32> to vector<1x8x128xf32>
    %10 = arith.addf %6, %9 : vector<1x8x128xf32>
    %11 = vector.shape_cast %0 : vector<1x8x32xf32> to vector<8x32xf32>
    %12 = arith.truncf %11 : vector<8x32xf32> to vector<8x32xbf16>
    %c0_9 = arith.constant 0 : index
    %c0_10 = arith.constant 0 : index
    %13 = vector.load %arg5[%c0_9, %c0_10] : memref<32x160xbf16, #tpu.memory_space<vmem>>, vector<32x160xbf16>
    %cst_11 = arith.constant dense<0.000000e+00> : vector<8x160xf32>
    %14 = tpu.matmul %12, %13, %cst_11 {dimension_numbers = #tpu.dot_dimension_numbers<[1], [0], [0], [1], [0, 0, 1, 1], [], []>} : vector<8x32xbf16>, vector<32x160xbf16>, vector<8x160xf32> -> vector<8x160xf32>
    %15 = vector.shape_cast %14 : vector<8x160xf32> to vector<1x8x160xf32>
    %c0_12 = arith.constant 0 : index
    %c0_13 = arith.constant 0 : index
    %16 = vector.load %arg6[%c0_12, %c0_13] : memref<1x160xf32, #tpu.memory_space<vmem>>, vector<1x160xf32>
    %17 = vector.shape_cast %16 : vector<1x160xf32> to vector<1x1x160xf32>
    %18 = vector.broadcast %17 : vector<1x1x160xf32> to vector<1x8x160xf32>
    %19 = arith.addf %15, %18 : vector<1x8x160xf32>
    %20 = vector.extract_strided_slice %19 {offsets = [0, 0, 0], sizes = [1, 8, 128], strides = [1, 1, 1]} : vector<1x8x160xf32> to vector<1x8x128xf32>
    %21 = vector.extract_strided_slice %19 {offsets = [0, 0, 128], sizes = [1, 8, 32], strides = [1, 1, 1]} : vector<1x8x160xf32> to vector<1x8x32xf32>
    %22 = arith.truncf %10 : vector<1x8x128xf32> to vector<1x8x128xbf16>
    %23 = arith.truncf %20 : vector<1x8x128xf32> to vector<1x8x128xbf16>
    %cst_14 = arith.constant dense<0.000000e+00> : vector<1x8x8xf32>
    %24 = tpu.matmul %22, %23, %cst_14 {dimension_numbers = #tpu.dot_dimension_numbers<[2], [2], [1], [1], [0, 0, 0, 1, 1, 1], [0], [0]>} : vector<1x8x128xbf16>, vector<1x8x128xbf16>, vector<1x8x8xf32> -> vector<1x8x8xf32>
    %cst_15 = arith.constant dense<0xFF800000> : vector<1x8xf32>
    %25 = vector.multi_reduction <maximumf>, %24, %cst_15 [2] : vector<1x8x8xf32> to vector<1x8xf32>
    %26 = vector.shape_cast %25 : vector<1x8xf32> to vector<1x8x1xf32>
    %27 = vector.broadcast %26 : vector<1x8x1xf32> to vector<1x8x8xf32>
    %28 = arith.subf %24, %27 : vector<1x8x8xf32>
    %29 = math.exp %28 : vector<1x8x8xf32>
    %cst_16 = arith.constant dense<0.000000e+00> : vector<1x8xf32>
    %30 = vector.multi_reduction <add>, %29, %cst_16 [2] : vector<1x8x8xf32> to vector<1x8xf32>
    %31 = vector.shape_cast %30 : vector<1x8xf32> to vector<1x8x1xf32>
    %32 = tpu.reciprocal %31 {approx = true} : vector<1x8x1xf32> -> vector<1x8x1xf32>
    %33 = vector.broadcast %32 : vector<1x8x1xf32> to vector<1x8x8xf32>
    %34 = arith.mulf %29, %33 : vector<1x8x8xf32>
    %35 = arith.truncf %34 : vector<1x8x8xf32> to vector<1x8x8xbf16>
    %36 = arith.truncf %21 : vector<1x8x32xf32> to vector<1x8x32xbf16>
    %cst_17 = arith.constant dense<0.000000e+00> : vector<1x8x32xf32>
    %37 = tpu.matmul %35, %36, %cst_17 {dimension_numbers = #tpu.dot_dimension_numbers<[2], [1], [1], [2], [0, 0, 0, 1, 1, 2], [0], [0]>} : vector<1x8x8xbf16>, vector<1x8x32xbf16>, vector<1x8x32xf32> -> vector<1x8x32xf32>
    %c0_18 = arith.constant 0 : index
    %c0_19 = arith.constant 0 : index
    %c0_20 = arith.constant 0 : index
    %38 = vector.load %arg7[%c0_18, %c0_19, %c0_20] : memref<1x8x32xf32, #tpu.memory_space<vmem>>, vector<1x8x32xf32>
    tpu.vector_store %arg7[%c0_18, %c0_19, %c0_20], %37 {strides = array<i32>} : memref<1x8x32xf32, #tpu.memory_space<vmem>>, vector<1x8x32xf32>,
    return
  }
  func.func @transform_0(%arg0: i32) -> (i32, i32, i32) {
    %c0_i32 = arith.constant 0 : i32
    %c0_i32_0 = arith.constant 0 : i32
    %c0_i32_1 = arith.constant 0 : i32
    return %arg0, %c0_i32, %c0_i32_0 : i32, i32, i32
  }
  func.func @transform_1(%arg0: i32) -> (i32, i32, i32) {
    %c0_i32 = arith.constant 0 : i32
    %c0_i32_0 = arith.constant 0 : i32
    %c0_i32_1 = arith.constant 0 : i32
    return %arg0, %c0_i32, %c0_i32_0 : i32, i32, i32
  }
  func.func @transform_2(%arg0: i32) -> (i32, i32) {
    %c0_i32 = arith.constant 0 : i32
    %c0_i32_0 = arith.constant 0 : i32
    %c0_i32_1 = arith.constant 0 : i32
    return %c0_i32, %c0_i32_0 : i32, i32
  }
  func.func @transform_3(%arg0: i32) -> (i32, i32) {
    %c0_i32 = arith.constant 0 : i32
    %c0_i32_0 = arith.constant 0 : i32
    %c0_i32_1 = arith.constant 0 : i32
    return %c0_i32, %c0_i32_0 : i32, i32
  }
  func.func @transform_4(%arg0: i32) -> (i32, i32) {
    %c0_i32 = arith.constant 0 : i32
    %c0_i32_0 = arith.constant 0 : i32
    %c0_i32_1 = arith.constant 0 : i32
    return %c0_i32, %c0_i32_0 : i32, i32
  }
  func.func @transform_5(%arg0: i32) -> (i32, i32) {
    %c0_i32 = arith.constant 0 : i32
    %c0_i32_0 = arith.constant 0 : i32
    %c0_i32_1 = arith.constant 0 : i32
    return %c0_i32, %c0_i32_0 : i32, i32
  }
  func.func @transform_6(%arg0: i32) -> (i32, i32, i32) {
    %c0_i32 = arith.constant 0 : i32
    %c0_i32_0 = arith.constant 0 : i32
    %c0_i32_1 = arith.constant 0 : i32
    return %arg0, %c0_i32, %c0_i32_0 : i32, i32, i32
  }
}

module attributes {stable_mosaic.version = 11 : i64} {
  func.func @_cross_sdpa_kernel(%arg0: i32, %arg1: memref<1x8x32xf32, #tpu.memory_space<vmem>>, %arg2: memref<1x8x32xf32, #tpu.memory_space<vmem>>, %arg3: memref<32x128xbf16, #tpu.memory_space<vmem>>, %arg4: memref<1x128xf32, #tpu.memory_space<vmem>>, %arg5: memref<32x160xbf16, #tpu.memory_space<vmem>>, %arg6: memref<1x160xf32, #tpu.memory_space<vmem>>, %arg7: memref<1x8x32xf32, #tpu.memory_space<vmem>>) attributes {dimension_semantics = [#tpu.dimension_semantics<parallel>], iteration_bounds = array<i64: 2>, scalar_prefetch = 0 : i64, scratch_operands = 0 : i64, tpu.core_type = #tpu.core_type<tc>, window_params = [{transform_indices = @transform_0, window_bounds = array<i64: 1, 8, 32>}, {transform_indices = @transform_1, window_bounds = array<i64: 1, 8, 32>}, {pipeline_mode = #tpu.pipeline_mode<synchronous>, transform_indices = @transform_2, window_bounds = array<i64: 32, 128>}, {pipeline_mode = #tpu.pipeline_mode<synchronous>, transform_indices = @transform_3, window_bounds = array<i64: 1, 128>}, {pipeline_mode = #tpu.pipeline_mode<synchronous>, transform_indices = @transform_4, window_bounds = array<i64: 32, 160>}, {pipeline_mode = #tpu.pipeline_mode<synchronous>, transform_indices = @transform_5, window_bounds = array<i64: 1, 160>}, {transform_indices = @transform_6, window_bounds = array<i64: 1, 8, 32>}]} {
    %c0 = arith.constant 0 : index
    %c0_0 = arith.constant 0 : index
    %c0_1 = arith.constant 0 : index
    %0 = vector.load %arg1[%c0, %c0_0, %c0_1] : memref<1x8x32xf32, #tpu.memory_space<vmem>>, vector<1x8x32xf32>
    %c0_2 = arith.constant 0 : index
    %c0_3 = arith.constant 0 : index
    %c0_4 = arith.constant 0 : index
    %1 = vector.load %arg2[%c0_2, %c0_3, %c0_4] : memref<1x8x32xf32, #tpu.memory_space<vmem>>, vector<1x8x32xf32>
    %2 = vector.shape_cast %1 : vector<1x8x32xf32> to vector<8x32xf32>
    %3 = arith.truncf %2 : vector<8x32xf32> to vector<8x32xbf16>
    %c0_5 = arith.constant 0 : index
    %c0_6 = arith.constant 0 : index
    %4 = vector.load %arg3[%c0_5, %c0_6] : memref<32x128xbf16, #tpu.memory_space<vmem>>, vector<32x128xbf16>
    %cst = arith.constant dense<0.000000e+00> : vector<8x128xf32>
    %5 = tpu.matmul %3, %4, %cst {dimension_numbers = #tpu.dot_dimension_numbers<[1], [0], [0], [1], [0, 0, 1, 1], [], []>} : vector<8x32xbf16>, vector<32x128xbf16>, vector<8x128xf32> -> vector<8x128xf32>
    %6 = vector.shape_cast %5 : vector<8x128xf32> to vector<1x8x128xf32>
    %c0_7 = arith.constant 0 : index
    %c0_8 = arith.constant 0 : index
    %7 = vector.load %arg4[%c0_7, %c0_8] : memref<1x128xf32, #tpu.memory_space<vmem>>, vector<1x128xf32>
    %8 = vector.shape_cast %7 : vector<1x128xf32> to vector<1x1x128xf32>
    %9 = vector.broadcast %8 : vector<1x1x128xf32> to vector<1x8x128xf32>
    %10 = arith.addf %6, %9 : vector<1x8x128xf32>
    %11 = vector.shape_cast %0 : vector<1x8x32xf32> to vector<8x32xf32>
    %12 = arith.truncf %11 : vector<8x32xf32> to vector<8x32xbf16>
    %c0_9 = arith.constant 0 : index
    %c0_10 = arith.constant 0 : index
    %13 = vector.load %arg5[%c0_9, %c0_10] : memref<32x160xbf16, #tpu.memory_space<vmem>>, vector<32x160xbf16>
    %cst_11 = arith.constant dense<0.000000e+00> : vector<8x160xf32>
    %14 = tpu.matmul %12, %13, %cst_11 {dimension_numbers = #tpu.dot_dimension_numbers<[1], [0], [0], [1], [0, 0, 1, 1], [], []>} : vector<8x32xbf16>, vector<32x160xbf16>, vector<8x160xf32> -> vector<8x160xf32>
    %15 = vector.shape_cast %14 : vector<8x160xf32> to vector<1x8x160xf32>
    %c0_12 = arith.constant 0 : index
    %c0_13 = arith.constant 0 : index
    %16 = vector.load %arg6[%c0_12, %c0_13] : memref<1x160xf32, #tpu.memory_space<vmem>>, vector<1x160xf32>
    %17 = vector.shape_cast %16 : vector<1x160xf32> to vector<1x1x160xf32>
    %18 = vector.broadcast %17 : vector<1x1x160xf32> to vector<1x8x160xf32>
    %19 = arith.addf %15, %18 : vector<1x8x160xf32>
    %20 = vector.extract_strided_slice %19 {offsets = [0, 0, 0], sizes = [1, 8, 128], strides = [1, 1, 1]} : vector<1x8x160xf32> to vector<1x8x128xf32>
    %21 = vector.extract_strided_slice %19 {offsets = [0, 0, 128], sizes = [1, 8, 32], strides = [1, 1, 1]} : vector<1x8x160xf32> to vector<1x8x32xf32>
    %22 = arith.truncf %10 : vector<1x8x128xf32> to vector<1x8x128xbf16>
    %23 = arith.truncf %20 : vector<1x8x128xf32> to vector<1x8x128xbf16>
    %cst_14 = arith.constant dense<0.000000e+00> : vector<1x8x8xf32>
    %24 = tpu.matmul %22, %23, %cst_14 {dimension_numbers = #tpu.dot_dimension_numbers<[2], [2], [1], [1], [0, 0, 0, 1, 1, 1], [0], [0]>} : vector<1x8x128xbf16>, vector<1x8x128xbf16>, vector<1x8x8xf32> -> vector<1x8x8xf32>
    %cst_15 = arith.constant dense<0xFF800000> : vector<1x8xf32>
    %25 = vector.multi_reduction <maximumf>, %24, %cst_15 [2] : vector<1x8x8xf32> to vector<1x8xf32>
    %26 = vector.shape_cast %25 : vector<1x8xf32> to vector<1x8x1xf32>
    %27 = vector.broadcast %26 : vector<1x8x1xf32> to vector<1x8x8xf32>
    %28 = arith.subf %24, %27 : vector<1x8x8xf32>
    %29 = math.exp %28 : vector<1x8x8xf32>
    %cst_16 = arith.constant dense<0.000000e+00> : vector<1x8xf32>
    %30 = vector.multi_reduction <add>, %29, %cst_16 [2] : vector<1x8x8xf32> to vector<1x8xf32>
    %31 = vector.shape_cast %30 : vector<1x8xf32> to vector<1x8x1xf32>
    %32 = tpu.reciprocal %31 {approx = true} : vector<1x8x1xf32> -> vector<1x8x1xf32>
    %33 = vector.broadcast %32 : vector<1x8x1xf32> to vector<1x8x8xf32>
    %34 = arith.mulf %29, %33 : vector<1x8x8xf32>
    %35 = arith.truncf %34 : vector<1x8x8xf32> to vector<1x8x8xbf16>
    %36 = arith.truncf %21 : vector<1x8x32xf32> to vector<1x8x32xbf16>
    %cst_17 = arith.constant dense<0.000000e+00> : vector<1x8x32xf32>
    %37 = tpu.matmul %35, %36, %cst_17 {dimension_numbers = #tpu.dot_dimension_numbers<[2], [1], [1], [2], [0, 0, 0, 1, 1, 2], [0], [0]>} : vector<1x8x8xbf16>, vector<1x8x32xbf16>, vector<1x8x32xf32> -> vector<1x8x32xf32>
    %c0_18 = arith.constant 0 : index
    %c0_19 = arith.constant 0 : index
    %c0_20 = arith.constant 0 : index
    %38 = vector.load %arg7[%c0_18, %c0_19, %c0_20] : memref<1x8x32xf32, #tpu.memory_space<vmem>>, vector<1x8x32xf32>
    tpu.vector_store %arg7[%c0_18, %c0_19, %c0_20], %37 {strides = array<i32>} : memref<1x8x32xf32, #tpu.memory_space<vmem>>, vector<1x8x32xf32>,
    return
  }
  func.func @transform_0(%arg0: i32) -> (i32, i32, i32) {
    %c0_i32 = arith.constant 0 : i32
    %c0_i32_0 = arith.constant 0 : i32
    %c0_i32_1 = arith.constant 0 : i32
    return %arg0, %c0_i32, %c0_i32_0 : i32, i32, i32
  }
  func.func @transform_1(%arg0: i32) -> (i32, i32, i32) {
    %c0_i32 = arith.constant 0 : i32
    %c0_i32_0 = arith.constant 0 : i32
    %c0_i32_1 = arith.constant 0 : i32
    return %arg0, %c0_i32, %c0_i32_0 : i32, i32, i32
  }
  func.func @transform_2(%arg0: i32) -> (i32, i32) {
    %c0_i32 = arith.constant 0 : i32
    %c0_i32_0 = arith.constant 0 : i32
    %c0_i32_1 = arith.constant 0 : i32
    return %c0_i32, %c0_i32_0 : i32, i32
  }
  func.func @transform_3(%arg0: i32) -> (i32, i32) {
    %c0_i32 = arith.constant 0 : i32
    %c0_i32_0 = arith.constant 0 : i32
    %c0_i32_1 = arith.constant 0 : i32
    return %c0_i32, %c0_i32_0 : i32, i32
  }
  func.func @transform_4(%arg0: i32) -> (i32, i32) {
    %c0_i32 = arith.constant 0 : i32
    %c0_i32_0 = arith.constant 0 : i32
    %c0_i32_1 = arith.constant 0 : i32
    return %c0_i32, %c0_i32_0 : i32, i32
  }
  func.func @transform_5(%arg0: i32) -> (i32, i32) {
    %c0_i32 = arith.constant 0 : i32
    %c0_i32_0 = arith.constant 0 : i32
    %c0_i32_1 = arith.constant 0 : i32
    return %c0_i32, %c0_i32_0 : i32, i32
  }
  func.func @transform_6(%arg0: i32) -> (i32, i32, i32) {
    %c0_i32 = arith.constant 0 : i32
    %c0_i32_0 = arith.constant 0 : i32
    %c0_i32_1 = arith.constant 0 : i32
    return %arg0, %c0_i32, %c0_i32_0 : i32, i32, i32
  }
}

</mosaic_0001>

<bundles_post_ra>
// kernel: tpu_custom_call.1
= control target key start
LH: loop header
LB: loop body
LE: loop exit
PB: predicated region body
PF: predicated region fallthrough
CT: control target
= control target key end

     0   :  { %s1346_s0 = inlined_call_operand.hbm [shape: f32[2,8,32], index: 0, kind: input, shape index: {}]   ;;  %s1347_s1 = inlined_call_operand.hbm [shape: f32[2,8,32], index: 1, kind: input, shape index: {}]   ;;  %s1348_s2 = inlined_call_operand.hbm [shape: bf16[32,128], index: 2, kind: input, shape index: {}]   ;;  %s1349_s3 = inlined_call_operand.vmem [shape: f32[1,128], index: 3, kind: input, shape index: {}]   ;;  %s1350_s4 = inlined_call_operand.hbm [shape: bf16[32,160], index: 4, kind: input, shape index: {}]   ;;  %s1351_s5 = inlined_call_operand.vmem [shape: f32[1,160], index: 5, kind: input, shape index: {}]   ;;  %s1352_s6 = inlined_call_operand.hbm [shape: f32[2,8,32], index: 6, kind: output, shape index: {}]  }
   0x1   :  { %1357 = sst [smem:[#allocation17_spill]] %s1348_s2 }
   0x2   :  { %1358 = sst [smem:[#allocation18_spill]] %s1350_s4 }
   0x3   :  { %11 = vsyncpa [#allocation3], 0 }
   0x4   :  { %13 = vsyncpa [#allocation3 + $0x1], 0 }
   0x5   :  { %14 = vsyncpa [#allocation6], 0 }
   0x6   :  { %16 = vsyncpa [#allocation6 + $0x1], 0 }
   0x7   :  { %17 = vsyncpa [#allocation9], 0 }
   0x8   :  { %18 = vsyncpa [#allocation4], 0 }
   0x9   :  { %20 = vsyncpa [#allocation4 + $0x1], 0  ;;  %s1098_s21 = smov 0   ;;  %s1100_s22 = smov 0  }
   0xa   :  { %s1102_s23 = smov 0   ;;  %s1104_s24 = smov 0  }
   0xb LB: > { %s1119_s25 = sadd.s32 4294967295, %s1049_s24   ;;  %s718_s26 = sadd.s32 4294967294, %s1049_s24   ;;  %s1049_s24 = sphi %s1104_s24, %s1382_s24   ;;  %s1045_s23 = sphi %s1102_s23, %s1381_s23   ;;  %s1041_s22 = sphi %s1100_s22, %s1380_s22   ;;  %s1037_s21 = sphi %s1098_s21, %s1379_s21  }
   0xc   : > { %p46_p0 = scmp.ne.s32.totalorder %s1041_s22, %s1037_s21  ;;  %p1353_p1 = scmp.eq.s32.totalorder %s1119_s25, 0 }
   0xd   : > { %p186_p3 = scmp.eq.s32.totalorder %s718_s26, 1  ;;  %p719_p5 = scmp.ge.s32.totalorder %s1049_s24, 1 }
   0xe   : > { %p1128_p4 = por %p1353_p1, %p46_p0  ;;  %p193_p7 = scmp.lt.s32.totalorder %s1049_s24, 3 }
   0xf   : > { %p1133_p6 = por %p186_p3, %p46_p0  ;;  %s1051_s30 = smov [#allocation7]  }
  0x10   : > { %s1359_s27 = scalar_select %p1128_p4, 1, 0 }
  0x11   : > { %s1360_s28 = scalar_select %p1133_p6, 1, 0 }
  0x12   : > { %p1138_p8 = pnand %p719_p5, %p193_p7  ;;  %s205_s7 = sshll.u32 %s1051_s30, 4  ;;  %s206_s7 = int_to_ptr.vmem [resolvable:$true] %s205_s7 }
  0x13   : > { %s1052_s9 = smov [#allocation8]   ;;  %s876_s11 = scalar_lea.vmem %s206_s7, 256 }
  0x14   : > { %s1361_s29 = scalar_select %p1138_p8, 1, 0 }
  0x15   : > { %p788_p9 = pneg %p1138_p8  ;;  %s221_s10 = sshll.u32 %s1052_s9, 4  ;;  %s222_s10 = int_to_ptr.vmem [resolvable:$true] %s221_s10 }
  0x16   : > { %p877_p13 = scmp.ne.s32.totalorder %s206_s7, %s876_s11  ;;  %p884_p5 = scmp.lt.s32.totalorder %s206_s7, %s206_s7 }
  0x17   : > { %p1147_p11 = pnand %p788_p9, %p1353_p1  ;;  %p885_p7 = scmp.lt.s32.totalorder %s876_s11, %s876_s11 }
  0x19   : > { %p867_p12 = pneg %p1147_p11  ;;  %p886_p10 = por %p885_p7, %p884_p5 }
  0x1b   : > { %p879_p0 = pnand %p877_p13, %p867_p12 }
  0x1d   : > { %p880_p3 = pneg %p879_p0 }
  0x1f   : > { %p887_p9 = pnand %p886_p10, %p880_p3 }
  0x21   : > { %890 = shalt.err (!%p887_p9)
}
  0x22   : > { %s1053_s12 = smov 64   ;;  %s1054_s13 = smov 4  }
  0x23   : > { %s1363_s2 = sld [smem:[#allocation17_spill]]  ;;  %s902_s16 = scalar_lea.vmem %s222_s10, 512 }
  0x24   : > { %p903_p1 = scmp.ne.s32.totalorder %s222_s10, %s902_s16  ;;  %p910_p2 = scmp.lt.s32.totalorder %s222_s10, %s222_s10 }
  0x25   : > { %p911_p6 = scmp.lt.s32.totalorder %s902_s16, %s902_s16 }
  0x26   : > { %p905_p13 = pnand %p903_p1, %p867_p12 }
  0x27   : > { %p912_p5 = por %p911_p6, %p910_p2 }
  0x28   : > { %p906_p0 = pneg %p905_p13 }
  0x29   : > { %791 = dma.hbm_to_vmem [thread:$0]  (!%p1147_p11), %s1363_s2, 256, %s206_s7, [#allocation6], %s1053_s12, %s1053_s12, %s1054_s13  }
  0x2a   : > { %p913_p10 = pnand %p912_p5, %p906_p0 }
  0x2c   : > { %916 = shalt.err (!%p913_p10)
}
  0x2d   : > { %s1055_s17 = smov 128   ;;  %s1056_s18 = smov 8  }
  0x2e   : > { %s1364_s4 = sld [smem:[#allocation18_spill]]  ;;  %s1170_s26 = sadd.s32 1, %s1049_s24  }
  0x2f   : > { %s30_s30 = ssub.s32 %s1049_s24, %s1170_s26  ;;  %s33_s7 = sadd.s32 1, %s1045_s23 }
  0x30   : > { %p31_p1 = scmp.eq.s32.totalorder %s30_s30, 0  ;;  %p40_p2 = scmp.ne.s32.totalorder %s1045_s23, %s1041_s22 }
  0x31   : > { %p41_p6 = scmp.eq.s32.totalorder %s1049_s24, 0  ;;  %p1366_p3 = scmp.eq.s32.totalorder %s1119_s25, 1 }
  0x32   : > { %s1179_s9 = scalar_select %p31_p1, %s1045_s23, %s33_s7  }
  0x33   : > { %p42_p12 = por %p41_p6, %p40_p2  ;;  %p1183_p7 = por %p1366_p3, %p40_p2 }
  0x34   : > { %794 = dma.hbm_to_vmem [thread:$0]  (!%p1147_p11), %s1364_s4, 512, %s222_s10, [#allocation9], %s1055_s17, %s1055_s17, %s1056_s18  }
  0x35   : > { %1365 = sst [smem:[#allocation16_spill]] %s1179_s9  ;;  %p808_p9 = scmp.lt.s32.totalorder %s1049_s24, 2 }
  0x36   : > { %s1367_s11 = scalar_select %p1183_p7, 1, 0 }
  0x37   : > { %s238_s8 = sand.u32 1, %s1045_s23   ;;  %s724_s12 = sshll.u32 %s1049_s24, 7 }
  0x38   : > { %s1189_s10 = sshll.u32 %s238_s8, 3  ;;  %s1195_s15 = scalar_lea.hbm %s1346_s0, %s724_s12 }
  0x39   : > { %s242_s16 = scalar_lea.vmem [#allocation2], %s1189_s10  ;;  %p1200_p11 = pnand %p808_p9, %p42_p12 }
  0x3a   : > { %s249_s17 = sshll.u32 %s242_s16, 4  ;;  %s1207_s30 = scalar_lea.hbm %s1347_s1, %s724_s12  ;;  %s1198_s17 = int_to_ptr.vmem [resolvable:$true] %s249_s17 }
  0x3b   : > { %s256_s7 = sand.u32 1, %s1049_s24   ;;  %s239_s13 = scalar_lea.sflag [#allocation3], %s238_s8 }
  0x3c   : > { %s917_s14 = scalar_lea.hbm %s1195_s15, 128  ;;  %p919_p0 = pneg %p1200_p11 }
  0x3d   : > { %p918_p13 = scmp.ne.s32.totalorder %s1195_s15, %s917_s14  ;;  %s922_s4 = scalar_lea.hbm %s1346_s0, 256 }
  0x3e   : > { %p923_p1 = scmp.lt.s32.totalorder %s1195_s15, %s1346_s0  ;;  %p924_p2 = scmp.lt.s32.totalorder %s922_s4, %s917_s14 }
  0x3f   : > { %p920_p5 = pnand %p919_p0, %p918_p13 }
  0x40   : > { %p925_p6 = por %p924_p2, %p923_p1 }
  0x41   : > { %p921_p10 = pneg %p920_p5 }
  0x43   : > { %p926_p12 = pnand %p925_p6, %p921_p10 }
  0x45   : > { %929 = shalt.err (!%p926_p12)
}
  0x46   : > { %s930_s8 = scalar_lea.vmem %s1198_s17, 128  ;;  %s1057_s2 = smov [#allocation2]  }
  0x47   : > { %p931_p3 = scmp.ne.s32.totalorder %s1198_s17, %s930_s8  ;;  %s935_s12 = sshll.u32 %s1057_s2, 4  ;;  %s936_s12 = int_to_ptr.vmem [resolvable:$false] %s935_s12 }
  0x48   : > { %s937_s20 = scalar_lea.vmem %s936_s12, 256  ;;  %p938_p5 = scmp.lt.s32.totalorder %s1198_s17, %s936_s12 }
  0x49   : > { %p933_p9 = pnand %p931_p3, %p919_p0  ;;  %p939_p7 = scmp.lt.s32.totalorder %s937_s20, %s930_s8 }
  0x4b   : > { %p934_p13 = pneg %p933_p9  ;;  %p940_p4 = por %p939_p7, %p938_p5 }
  0x4d   : > { %p941_p1 = pnand %p940_p4, %p934_p13 }
  0x4f   : > { %944 = shalt.err (!%p941_p1)
}
  0x50   : > { %798 = dma.hbm_to_vmem [thread:$0]  (!%p1200_p11), %s1195_s15, 128, %s1198_s17, %s239_s13  }
  0x51   : > { %s260_s4 = scalar_lea.vmem [#allocation5], %s1189_s10  ;;  %s257_s14 = scalar_lea.sflag [#allocation6], %s256_s7 }
  0x52   : > { %s267_s9 = sshll.u32 %s260_s4, 4  ;;  %s945_s16 = scalar_lea.hbm %s1207_s30, 128  ;;  %s268_s9 = int_to_ptr.vmem [resolvable:$true] %s267_s9 }
  0x53   : > { %p946_p7 = scmp.ne.s32.totalorder %s1207_s30, %s945_s16  ;;  %s950_s2 = scalar_lea.hbm %s1347_s1, 256 }
  0x54   : > { %p951_p2 = scmp.lt.s32.totalorder %s1207_s30, %s1347_s1  ;;  %p952_p6 = scmp.lt.s32.totalorder %s950_s2, %s945_s16 }
  0x55   : > { %p948_p4 = pnand %p946_p7, %p919_p0 }
  0x56   : > { %p953_p12 = por %p952_p6, %p951_p2 }
  0x57   : > { %p949_p10 = pneg %p948_p4 }
  0x59   : > { %p954_p3 = pnand %p953_p12, %p949_p10 }
  0x5b   : > { %957 = shalt.err (!%p954_p3)
}
  0x5c   : > { %s958_s10 = scalar_lea.vmem %s268_s9, 128  ;;  %s1058_s15 = smov [#allocation5]  }
  0x5d   : > { %p959_p9 = scmp.ne.s32.totalorder %s268_s9, %s958_s10  ;;  %s963_s17 = sshll.u32 %s1058_s15, 4  ;;  %s964_s17 = int_to_ptr.vmem [resolvable:$false] %s963_s17 }
  0x5e   : > { %s965_s7 = scalar_lea.vmem %s964_s17, 256  ;;  %p966_p1 = scmp.lt.s32.totalorder %s268_s9, %s964_s17 }
  0x5f   : > { %p961_p13 = pnand %p959_p9, %p919_p0  ;;  %p967_p7 = scmp.lt.s32.totalorder %s965_s7, %s958_s10 }
  0x61   : > { %p962_p5 = pneg %p961_p13  ;;  %p968_p4 = por %p967_p7, %p966_p1 }
  0x63   : > { %p969_p8 = pnand %p968_p4, %p962_p5 }
  0x65   : > { %972 = shalt.err (!%p969_p8)
}
  0x66   : > { %801 = dma.hbm_to_vmem [thread:$0]  (!%p1200_p11), %s1207_s30, 128, %s268_s9, %s257_s14  }
  0x67   : > { %p1369_p10 = scmp.ne.s32.totalorder %s1361_s29, 0 }
  0x68   : > { %s1258_s13 = sand.u32 (!%p1369_p10), 1, %s1041_s22   ;;  %p1370_p0 = scmp.ne.s32.totalorder (!%p1369_p10), %s1359_s27, 0 }
  0x69   : > { %276 = sbr.rel (%p1369_p10) target bundleno = 1050 (0x41a), region = 44  ;;  %s1261_s4 = sshll.u32 (!%p1369_p10), %s1258_s13, 3 }
  0x6a   : > { %s279_s16 = scalar_lea.sflag (!%p1369_p10), [#allocation3], %s1258_s13  ;;  %s282_s19 = scalar_lea.vmem (!%p1369_p10), [#allocation2], %s1261_s4 }
  0x6e   : > { %1016 = dma.done.wait (%p1370_p0), %s279_s16, 128  }
  0x6f   : > { %1018 = vsyncadd (%p1370_p0), %s279_s16, 4294967168  ;;  %s287_s29 = sand.u32 1, %s1119_s25   ;;  %s291_s30 = scalar_lea.vmem [#allocation5], %s1261_s4 }
  0x70   : > { %s288_s18 = scalar_lea.sflag [#allocation6], %s287_s29 }
  0x71   : > { %1020 = dma.done.wait (%p1370_p0), %s288_s18, 128  }
  0x72   : > { %1022 = vsyncadd (%p1370_p0), %s288_s18, 4294967168  ;;  %p1371_p8 = scmp.eq.s32.totalorder %s1119_s25, 0 }
  0x74   : > { %1024 = dma.done.wait (%p1371_p8), [#allocation6], 256   ;;  %p1372_p11 = pmov %p1371_p8 }
  0x75   : > { %p1373_p2 = pmov %p1371_p8 }
  0x76   : > { %1026 = vsyncadd (%p1372_p11), [#allocation6], 4294967040 }
  0x77   : > { %1028 = dma.done.wait (%p1373_p2), [#allocation9], 512   ;;  %p1374_p6 = pmov %p1373_p2 }
  0x78   : > { %v1059_v0 = vmov 0.0   ;;  %v1060_v1 = vmov 0   ;;  %vm1061_vm0 = vmmov 0   ;;  %v853_v2 = vld [vmem:[#allocation8 + $0x14] ss:$8 sps:$4 sm:$0xff]   ;;  %v335_v9 = vld [vmem:[%s291_s30] sm:$0xff]  ;;  %v476_v12 = vlaneseq }
  0x79   : > { %1030 = vsyncadd (%p1374_p6), [#allocation9], 4294966784  ;;  %754 = vmatprep.subr.bf16.mxu0 %v1059_v0  ;;  %465 = vmatprep.mubr.bf16.mxu1 %v1060_v1  ;;  %v855_v3 = vld [vmem:[#allocation8 + $0x10] ss:$8 sps:$4 sm:$0xff]   ;;  %v857_v5 = vld [vmem:[#allocation8 + $0x4] ss:$8 sps:$4 sm:$0xff]   ;;  %v336_v11 = vpack.c.bf16 %v335_v9, %v335_v9 }
  0x7a   : > { %758 = vmatprep.mubr.msk.bf16.mxu0 %vm1061_vm0, %v1059_v0  ;;  %445 = vmatprep.subr.bf16.mxu1 %v853_v2  ;;  %v856_v4 = vld [vmem:[#allocation7 + $0x8] sm:$0xff]   ;;  %v859_v6 = vld [vmem:[#allocation8] ss:$8 sps:$4 sm:$0xff]   ;;  %v860_v7 = vld [vmem:[#allocation7] sm:$0xff]   ;;  %vm353_vm1 = vcmask 261120   ;;  %v477_v13 = vshrl.u32 %v476_v12, 7 }
  0x7b   : > { %446 = vmatpush1.bf16.msra.mxu1 %v855_v3  ;;  %755 = vmatpush3.bf16.msra.mxu0 %v856_v4  ;;  %v334_v8 = vld [vmem:[%s282_s19] sm:$0xff]  ;;  %vm547_vm2 = vcmask 1043456   ;;  %vm530_vm3 = vcmask 64512   ;;  %s744_s2 = sshll.u32 %s1119_s25, 7  ;;  %s332_s12 = scalar_lea.vmem [#allocation10], %s1261_s4 }
  0x7c   : > { %447 = vmatprep.subr.bf16.mxu1 %v857_v5  ;;  %756 = vmatprep.subr.bf16.mxu0 %v1059_v0  ;;  %v405_v10 = vpack.c.bf16 %v334_v8, %v334_v8  ;;  %v478_v14 = vsub.s32 0, %v477_v13  ;;  %v474_v15 = vld [vmem:[%s1351_s5] sm:$0x3]  ;;  %v482_v16 = vsub.s32 1, %v477_v13  ;;  %s606_s20 = sshll.u32 %s332_s12, 4  ;;  %s1302_s17 = scalar_lea.hbm %s1352_s6, %s744_s2  ;;  %s1304_s20 = int_to_ptr.vmem [resolvable:$true] %s606_s20 }
  0x7d   : > { %v736_v22 = vld [vmem:[%s1349_s3] ss:$0 sm:$0xff]  ;;  %s593_s7 = scalar_lea.sflag [#allocation4], %s1258_s13  ;;  %s973_s16 = scalar_lea.vmem %s1304_s20, 128 }
  0x7e   : > { %v479_v17 = vrot.slane %v474_v15, %v478_v14  ;;  %v483_v18 = vrot.slane %v474_v15, %v482_v16  ;;  %p974_p12 = scmp.ne.s32.totalorder %s1304_s20, %s973_s16  ;;  %p1375_p3 = scmp.ne.s32.totalorder %s1367_s11, 0 }
  0x7f   : > { %448 = vmatpush1.bf16.msra.mxu1 %v859_v6  ;;  %757 = vmatpush3.bf16.msra.mxu0 %v860_v7  ;;  %s1062_s25 = smov [#allocation10]  }
  0x80   : > { %768 = vmatprep.subr.bf16.mxu1 %v1059_v0  ;;  %762 = vmatprep.subr.bf16.mxu0 %v1059_v0  ;;  %p975_p9 = pnand %p974_p12, %p1375_p3  ;;  %s977_s4 = sshll.u32 %s1062_s25, 4  ;;  %s978_s4 = int_to_ptr.vmem [resolvable:$false] %s977_s4 }
  0x81   : > { %s979_s19 = scalar_lea.vmem %s978_s4, 256  ;;  %p980_p5 = scmp.lt.s32.totalorder %s1304_s20, %s978_s4 }
  0x82   : > { %741 = vmatmul.mubr.msk.bf16.vlgmr.msra.gmra.mxu1 %vm353_vm1, %v405_v10  ;;  %759 = vmatmul.mubr.msk.bf16.vlgmr.msra.gmra.mxu0 %vm353_vm1, %v336_v11  ;;  %p976_p13 = pneg %p975_p9  ;;  %p981_p1 = scmp.lt.s32.totalorder %s979_s19, %s973_s16 }
  0x83   : > { %770 = vmatprep.mubr.msk.bf16.mxu1 %vm1061_vm0, %v1059_v0  ;;  %764 = vmatprep.mubr.msk.bf16.mxu0 %vm1061_vm0, %v1059_v0 }
  0x84   : > { %p982_p7 = por %p981_p1, %p980_p5 }
  0x86   : > { %p983_p4 = pnand %p982_p7, %p976_p13 }
 0x142   : > { %v467_v19 = vpop.f32.mrf.mxu1  ;;  %v391_v21 = vpop.f32.mrf.mxu0 }
 0x143   : > { %v486_v20 = vadd.f32 %v479_v17, %v467_v19  ;;  %v404_v27 = vadd.f32 %v736_v22, %v391_v21 }
 0x144   : > { %v469_v23 = vpop.f32.mrf.mxu1  ;;  %v760_v26 = vpop.f32.mrf.mxu0 }
 0x145   : > { %v489_v24 = vpack.c.bf16 %v486_v20, %v486_v20  ;;  %v487_v25 = vadd.f32 %v483_v18, %v469_v23  ;;  %v488_v34 = vpack.c.bf16 %v404_v27, %v404_v27 }
 0x146   : > { %v471_v28 = vpop.f32.mrf.mxu1  ;;  %v394_v30 = vpop.f32.mrf.mxu0 }
 0x147   : > { %v543_v29 = vpack.c.bf16 %v487_v25, %v487_v25  ;;  %763 = vmatpush3.bf16.xpose.msra.mxu0 %v489_v24 }
 0x148   : > { %v472_v31 = vpop.f32.mrf.mxu1  ;;  %v761_v33 = vpop.f32.mrf.mxu0 }
 0x149   : > { %v549_v32 = vsel %vm547_vm2, %v543_v29, 0 }
 0x14a   : > { %769 = vmatpush3.bf16.msra.mxu1 %v549_v32 }
 0x14e   : > { %765 = vmatmul.mubr.bf16.vlgmr.msra.gmra.mxu0 %v488_v34 }
 0x20e   : > { %v524_v35 = vpop.f32.mrf.mxu0 }
 0x20f   : > { %v531_v36 = vsel %vm530_vm3, %v524_v35, -inf }
 0x210   : > { %532 = vmax.xlane.f32.xlu0 %v531_v36  ;;  %v766_v37 = vpop.f32.mrf.mxu0 }
 0x212   : > { %v527_v38 = vpop.f32.mrf.mxu0 }
 0x214   : > { %v767_v39 = vpop.f32.mrf.mxu0 }
 0x299   : > { %v533_v40 = vpop.xlane.xlu0 %532 }
 0x29a   : > { %v534_v41 = vsub.f32 %v524_v35, %v533_v40 }
 0x29c   : > { %v535_v42 = vmul.f32 1.442695, %v534_v41 }
 0x29e   : > { %861 = vpow2.f32 %v535_v42 }
 0x2ab   : > { %v862_v43 = vpop.eup %861 }
 0x2ac   : > { %v537_v44 = vsel %vm530_vm3, %v862_v43, 0.0 }
 0x2ad   : > { %538 = vadd.xlane.f32.xlu0 %v537_v44 }
 0x336   : > { %v539_v45 = vpop.xlane.xlu0 %538 }
 0x337   : > { %863 = vrcp.f32 %v539_v45 }
 0x344   : > { %v864_v46 = vpop.eup %863 }
 0x345   : > { %v541_v47 = vmul.f32 %v864_v46, %v862_v43 }
 0x347   : > { %v542_v48 = vpack.c.bf16 %v541_v47, %v541_v47 }
 0x349   : > { %771 = vmatmul.mubr.msk.bf16.vlgmr.msra.gmra.mxu1 %vm530_vm3, %v542_v48 }
 0x409   : > { %v585_v49 = vpop.f32.mrf.mxu1 }
 0x40a   : > { %591 = vst.msk [vmem:[%s332_s12] sm:$0xff] %vm353_vm1, %v585_v49 }
 0x40b   : > { %v772_v50 = vpop.f32.mrf.mxu1 }
 0x40c   : > { %986 = shalt.err (!%p983_p4)
}
 0x40d   : > { %s987_s29 = scalar_lea.hbm %s1302_s17, 128  ;;  %s991_s30 = scalar_lea.hbm %s1352_s6, 256 }
 0x40e   : > { %p988_p10 = scmp.ne.s32.totalorder %s1302_s17, %s987_s29  ;;  %p992_p11 = scmp.lt.s32.totalorder %s1302_s17, %s1352_s6 }
 0x40f   : > { %p993_p2 = scmp.lt.s32.totalorder %s991_s30, %s987_s29 }
 0x410   : > { %p989_p0 = pnand %p988_p10, %p1375_p3 }
 0x411   : > { %p994_p6 = por %p993_p2, %p992_p11 }
 0x412   : > { %p990_p8 = pneg %p989_p0 }
 0x414   : > { %p995_p12 = pnand %p994_p6, %p990_p8 }
 0x416   : > { %998 = shalt.err (!%p995_p12)
}
 0x417   : > { %786 = dma.vmem_to_hbm [thread:$0]  (%p1375_p3), %s1304_s20, 128, %s1302_s17, %s593_s7   ;;  %v588_v51 = vpop.f32.mrf.mxu1 }
 0x419   : > { %v773_v52 = vpop.f32.mrf.mxu1 }
 0x41a PF: > { %s618_s14 = sand.u32 1, %s1037_s21   ;;  %p1376_p9 = scmp.ne.s32.totalorder %s1360_s28, 0 }
 0x41b   : > { %p1377_p13 = scmp.ge.s32.totalorder %s1049_s24, 2  ;;  %s619_s8 = scalar_lea.sflag [#allocation4], %s618_s14 }
 0x41d   : > { %p803_p5 = pnand %p1377_p13, %p1376_p9 }
 0x41f   : > { %p804_p1 = pneg %p803_p5 }
 0x421   : > { %1032 = dma.done.wait (%p804_p1), %s619_s8, 128  }
 0x422   : > { %1034 = vsyncadd (%p804_p1), %s619_s8, 4294967168  ;;  %s1378_s11 = sld [smem:[#allocation16_spill]]  ;;  %p23_p3 = scmp.ge.s32.totalorder %s1170_s26, 4  }
 0x423   : > { %s1379_s21 = smov %s1041_s22  ;;  %s1380_s22 = smov %s1045_s23 }
 0x424   : > { %s1382_s24 = smov %s1170_s26  ;;  %25 = sbr.rel (!%p23_p3) target bundleno = 11 (0xb), region = 110 }
 0x428   : > { %s1381_s23 = smov %s1378_s11 }
 0x429   :  { %624 = vsyncpa [#allocation3], 1 }
 0x42a   :  { %626 = vsyncpa [#allocation3 + $0x1], 1 }
 0x42b   :  { %627 = vsyncpa [#allocation6], 1 }
 0x42c   :  { %629 = vsyncpa [#allocation6 + $0x1], 1 }
 0x42d   :  { %630 = vsyncpa [#allocation9], 1 }
 0x42e   :  { %631 = vsyncpa [#allocation4], 1 }
 0x42f   :  { %633 = vsyncpa [#allocation4 + $0x1], 1 }

// kernel: tpu_custom_call.1
= control target key start
LH: loop header
LB: loop body
LE: loop exit
PB: predicated region body
PF: predicated region fallthrough
CT: control target
= control target key end

     0   :  { %s1346_s0 = inlined_call_operand.hbm [shape: f32[2,8,32], index: 0, kind: input, shape index: {}]   ;;  %s1347_s1 = inlined_call_operand.hbm [shape: f32[2,8,32], index: 1, kind: input, shape index: {}]   ;;  %s1348_s2 = inlined_call_operand.hbm [shape: bf16[32,128], index: 2, kind: input, shape index: {}]   ;;  %s1349_s3 = inlined_call_operand.vmem [shape: f32[1,128], index: 3, kind: input, shape index: {}]   ;;  %s1350_s4 = inlined_call_operand.hbm [shape: bf16[32,160], index: 4, kind: input, shape index: {}]   ;;  %s1351_s5 = inlined_call_operand.vmem [shape: f32[1,160], index: 5, kind: input, shape index: {}]   ;;  %s1352_s6 = inlined_call_operand.hbm [shape: f32[2,8,32], index: 6, kind: output, shape index: {}]  }
   0x1   :  { %1357 = sst [smem:[#allocation17_spill]] %s1348_s2 }
   0x2   :  { %1358 = sst [smem:[#allocation18_spill]] %s1350_s4 }
   0x3   :  { %11 = vsyncpa [#allocation3], 0 }
   0x4   :  { %13 = vsyncpa [#allocation3 + $0x1], 0 }
   0x5   :  { %14 = vsyncpa [#allocation6], 0 }
   0x6   :  { %16 = vsyncpa [#allocation6 + $0x1], 0 }
   0x7   :  { %17 = vsyncpa [#allocation9], 0 }
   0x8   :  { %18 = vsyncpa [#allocation4], 0 }
   0x9   :  { %20 = vsyncpa [#allocation4 + $0x1], 0  ;;  %s1098_s21 = smov 0   ;;  %s1100_s22 = smov 0  }
   0xa   :  { %s1102_s23 = smov 0   ;;  %s1104_s24 = smov 0  }
   0xb LB: > { %s1119_s25 = sadd.s32 4294967295, %s1049_s24   ;;  %s718_s26 = sadd.s32 4294967294, %s1049_s24   ;;  %s1049_s24 = sphi %s1104_s24, %s1382_s24   ;;  %s1045_s23 = sphi %s1102_s23, %s1381_s23   ;;  %s1041_s22 = sphi %s1100_s22, %s1380_s22   ;;  %s1037_s21 = sphi %s1098_s21, %s1379_s21  }
   0xc   : > { %p46_p0 = scmp.ne.s32.totalorder %s1041_s22, %s1037_s21  ;;  %p1353_p1 = scmp.eq.s32.totalorder %s1119_s25, 0 }
   0xd   : > { %p186_p3 = scmp.eq.s32.totalorder %s718_s26, 1  ;;  %p719_p5 = scmp.ge.s32.totalorder %s1049_s24, 1 }
   0xe   : > { %p1128_p4 = por %p1353_p1, %p46_p0  ;;  %p193_p7 = scmp.lt.s32.totalorder %s1049_s24, 3 }
   0xf   : > { %p1133_p6 = por %p186_p3, %p46_p0  ;;  %s1051_s30 = smov [#allocation7]  }
  0x10   : > { %s1359_s27 = scalar_select %p1128_p4, 1, 0 }
  0x11   : > { %s1360_s28 = scalar_select %p1133_p6, 1, 0 }
  0x12   : > { %p1138_p8 = pnand %p719_p5, %p193_p7  ;;  %s205_s7 = sshll.u32 %s1051_s30, 4  ;;  %s206_s7 = int_to_ptr.vmem [resolvable:$true] %s205_s7 }
  0x13   : > { %s1052_s9 = smov [#allocation8]   ;;  %s876_s11 = scalar_lea.vmem %s206_s7, 256 }
  0x14   : > { %s1361_s29 = scalar_select %p1138_p8, 1, 0 }
  0x15   : > { %p788_p9 = pneg %p1138_p8  ;;  %s221_s10 = sshll.u32 %s1052_s9, 4  ;;  %s222_s10 = int_to_ptr.vmem [resolvable:$true] %s221_s10 }
  0x16   : > { %p877_p13 = scmp.ne.s32.totalorder %s206_s7, %s876_s11  ;;  %p884_p5 = scmp.lt.s32.totalorder %s206_s7, %s206_s7 }
  0x17   : > { %p1147_p11 = pnand %p788_p9, %p1353_p1  ;;  %p885_p7 = scmp.lt.s32.totalorder %s876_s11, %s876_s11 }
  0x19   : > { %p867_p12 = pneg %p1147_p11  ;;  %p886_p10 = por %p885_p7, %p884_p5 }
  0x1b   : > { %p879_p0 = pnand %p877_p13, %p867_p12 }
  0x1d   : > { %p880_p3 = pneg %p879_p0 }
  0x1f   : > { %p887_p9 = pnand %p886_p10, %p880_p3 }
  0x21   : > { %890 = shalt.err (!%p887_p9)
}
  0x22   : > { %s1053_s12 = smov 64   ;;  %s1054_s13 = smov 4  }
  0x23   : > { %s1363_s2 = sld [smem:[#allocation17_spill]]  ;;  %s902_s16 = scalar_lea.vmem %s222_s10, 512 }
  0x24   : > { %p903_p1 = scmp.ne.s32.totalorder %s222_s10, %s902_s16  ;;  %p910_p2 = scmp.lt.s32.totalorder %s222_s10, %s222_s10 }
  0x25   : > { %p911_p6 = scmp.lt.s32.totalorder %s902_s16, %s902_s16 }
  0x26   : > { %p905_p13 = pnand %p903_p1, %p867_p12 }
  0x27   : > { %p912_p5 = por %p911_p6, %p910_p2 }
  0x28   : > { %p906_p0 = pneg %p905_p13 }
  0x29   : > { %791 = dma.hbm_to_vmem [thread:$0]  (!%p1147_p11), %s1363_s2, 256, %s206_s7, [#allocation6], %s1053_s12, %s1053_s12, %s1054_s13  }
  0x2a   : > { %p913_p10 = pnand %p912_p5, %p906_p0 }
  0x2c   : > { %916 = shalt.err (!%p913_p10)
}
  0x2d   : > { %s1055_s17 = smov 128   ;;  %s1056_s18 = smov 8  }
  0x2e   : > { %s1364_s4 = sld [smem:[#allocation18_spill]]  ;;  %s1170_s26 = sadd.s32 1, %s1049_s24  }
  0x2f   : > { %s30_s30 = ssub.s32 %s1049_s24, %s1170_s26  ;;  %s33_s7 = sadd.s32 1, %s1045_s23 }
  0x30   : > { %p31_p1 = scmp.eq.s32.totalorder %s30_s30, 0  ;;  %p40_p2 = scmp.ne.s32.totalorder %s1045_s23, %s1041_s22 }
  0x31   : > { %p41_p6 = scmp.eq.s32.totalorder %s1049_s24, 0  ;;  %p1366_p3 = scmp.eq.s32.totalorder %s1119_s25, 1 }
  0x32   : > { %s1179_s9 = scalar_select %p31_p1, %s1045_s23, %s33_s7  }
  0x33   : > { %p42_p12 = por %p41_p6, %p40_p2  ;;  %p1183_p7 = por %p1366_p3, %p40_p2 }
  0x34   : > { %794 = dma.hbm_to_vmem [thread:$0]  (!%p1147_p11), %s1364_s4, 512, %s222_s10, [#allocation9], %s1055_s17, %s1055_s17, %s1056_s18  }
  0x35   : > { %1365 = sst [smem:[#allocation16_spill]] %s1179_s9  ;;  %p808_p9 = scmp.lt.s32.totalorder %s1049_s24, 2 }
  0x36   : > { %s1367_s11 = scalar_select %p1183_p7, 1, 0 }
  0x37   : > { %s238_s8 = sand.u32 1, %s1045_s23   ;;  %s724_s12 = sshll.u32 %s1049_s24, 7 }
  0x38   : > { %s1189_s10 = sshll.u32 %s238_s8, 3  ;;  %s1195_s15 = scalar_lea.hbm %s1346_s0, %s724_s12 }
  0x39   : > { %s242_s16 = scalar_lea.vmem [#allocation2], %s1189_s10  ;;  %p1200_p11 = pnand %p808_p9, %p42_p12 }
  0x3a   : > { %s249_s17 = sshll.u32 %s242_s16, 4  ;;  %s1207_s30 = scalar_lea.hbm %s1347_s1, %s724_s12  ;;  %s1198_s17 = int_to_ptr.vmem [resolvable:$true] %s249_s17 }
  0x3b   : > { %s256_s7 = sand.u32 1, %s1049_s24   ;;  %s239_s13 = scalar_lea.sflag [#allocation3], %s238_s8 }
  0x3c   : > { %s917_s14 = scalar_lea.hbm %s1195_s15, 128  ;;  %p919_p0 = pneg %p1200_p11 }
  0x3d   : > { %p918_p13 = scmp.ne.s32.totalorder %s1195_s15, %s917_s14  ;;  %s922_s4 = scalar_lea.hbm %s1346_s0, 256 }
  0x3e   : > { %p923_p1 = scmp.lt.s32.totalorder %s1195_s15, %s1346_s0  ;;  %p924_p2 = scmp.lt.s32.totalorder %s922_s4, %s917_s14 }
  0x3f   : > { %p920_p5 = pnand %p919_p0, %p918_p13 }
  0x40   : > { %p925_p6 = por %p924_p2, %p923_p1 }
  0x41   : > { %p921_p10 = pneg %p920_p5 }
  0x43   : > { %p926_p12 = pnand %p925_p6, %p921_p10 }
  0x45   : > { %929 = shalt.err (!%p926_p12)
}
  0x46   : > { %s930_s8 = scalar_lea.vmem %s1198_s17, 128  ;;  %s1057_s2 = smov [#allocation2]  }
  0x47   : > { %p931_p3 = scmp.ne.s32.totalorder %s1198_s17, %s930_s8  ;;  %s935_s12 = sshll.u32 %s1057_s2, 4  ;;  %s936_s12 = int_to_ptr.vmem [resolvable:$false] %s935_s12 }
  0x48   : > { %s937_s20 = scalar_lea.vmem %s936_s12, 256  ;;  %p938_p5 = scmp.lt.s32.totalorder %s1198_s17, %s936_s12 }
  0x49   : > { %p933_p9 = pnand %p931_p3, %p919_p0  ;;  %p939_p7 = scmp.lt.s32.totalorder %s937_s20, %s930_s8 }
  0x4b   : > { %p934_p13 = pneg %p933_p9  ;;  %p940_p4 = por %p939_p7, %p938_p5 }
  0x4d   : > { %p941_p1 = pnand %p940_p4, %p934_p13 }
  0x4f   : > { %944 = shalt.err (!%p941_p1)
}
  0x50   : > { %798 = dma.hbm_to_vmem [thread:$0]  (!%p1200_p11), %s1195_s15, 128, %s1198_s17, %s239_s13  }
  0x51   : > { %s260_s4 = scalar_lea.vmem [#allocation5], %s1189_s10  ;;  %s257_s14 = scalar_lea.sflag [#allocation6], %s256_s7 }
  0x52   : > { %s267_s9 = sshll.u32 %s260_s4, 4  ;;  %s945_s16 = scalar_lea.hbm %s1207_s30, 128  ;;  %s268_s9 = int_to_ptr.vmem [resolvable:$true] %s267_s9 }
  0x53   : > { %p946_p7 = scmp.ne.s32.totalorder %s1207_s30, %s945_s16  ;;  %s950_s2 = scalar_lea.hbm %s1347_s1, 256 }
  0x54   : > { %p951_p2 = scmp.lt.s32.totalorder %s1207_s30, %s1347_s1  ;;  %p952_p6 = scmp.lt.s32.totalorder %s950_s2, %s945_s16 }
  0x55   : > { %p948_p4 = pnand %p946_p7, %p919_p0 }
  0x56   : > { %p953_p12 = por %p952_p6, %p951_p2 }
  0x57   : > { %p949_p10 = pneg %p948_p4 }
  0x59   : > { %p954_p3 = pnand %p953_p12, %p949_p10 }
  0x5b   : > { %957 = shalt.err (!%p954_p3)
}
  0x5c   : > { %s958_s10 = scalar_lea.vmem %s268_s9, 128  ;;  %s1058_s15 = smov [#allocation5]  }
  0x5d   : > { %p959_p9 = scmp.ne.s32.totalorder %s268_s9, %s958_s10  ;;  %s963_s17 = sshll.u32 %s1058_s15, 4  ;;  %s964_s17 = int_to_ptr.vmem [resolvable:$false] %s963_s17 }
  0x5e   : > { %s965_s7 = scalar_lea.vmem %s964_s17, 256  ;;  %p966_p1 = scmp.lt.s32.totalorder %s268_s9, %s964_s17 }
  0x5f   : > { %p961_p13 = pnand %p959_p9, %p919_p0  ;;  %p967_p7 = scmp.lt.s32.totalorder %s965_s7, %s958_s10 }
  0x61   : > { %p962_p5 = pneg %p961_p13  ;;  %p968_p4 = por %p967_p7, %p966_p1 }
  0x63   : > { %p969_p8 = pnand %p968_p4, %p962_p5 }
  0x65   : > { %972 = shalt.err (!%p969_p8)
}
  0x66   : > { %801 = dma.hbm_to_vmem [thread:$0]  (!%p1200_p11), %s1207_s30, 128, %s268_s9, %s257_s14  }
  0x67   : > { %p1369_p10 = scmp.ne.s32.totalorder %s1361_s29, 0 }
  0x68   : > { %s1258_s13 = sand.u32 (!%p1369_p10), 1, %s1041_s22   ;;  %p1370_p0 = scmp.ne.s32.totalorder (!%p1369_p10), %s1359_s27, 0 }
  0x69   : > { %276 = sbr.rel (%p1369_p10) target bundleno = 1050 (0x41a), region = 44  ;;  %s1261_s4 = sshll.u32 (!%p1369_p10), %s1258_s13, 3 }
  0x6a   : > { %s279_s16 = scalar_lea.sflag (!%p1369_p10), [#allocation3], %s1258_s13  ;;  %s282_s19 = scalar_lea.vmem (!%p1369_p10), [#allocation2], %s1261_s4 }
  0x6e   : > { %1016 = dma.done.wait (%p1370_p0), %s279_s16, 128  }
  0x6f   : > { %1018 = vsyncadd (%p1370_p0), %s279_s16, 4294967168  ;;  %s287_s29 = sand.u32 1, %s1119_s25   ;;  %s291_s30 = scalar_lea.vmem [#allocation5], %s1261_s4 }
  0x70   : > { %s288_s18 = scalar_lea.sflag [#allocation6], %s287_s29 }
  0x71   : > { %1020 = dma.done.wait (%p1370_p0), %s288_s18, 128  }
  0x72   : > { %1022 = vsyncadd (%p1370_p0), %s288_s18, 4294967168  ;;  %p1371_p8 = scmp.eq.s32.totalorder %s1119_s25, 0 }
  0x74   : > { %1024 = dma.done.wait (%p1371_p8), [#allocation6], 256   ;;  %p1372_p11 = pmov %p1371_p8 }
  0x75   : > { %p1373_p2 = pmov %p1371_p8 }
  0x76   : > { %1026 = vsyncadd (%p1372_p11), [#allocation6], 4294967040 }
  0x77   : > { %1028 = dma.done.wait (%p1373_p2), [#allocation9], 512   ;;  %p1374_p6 = pmov %p1373_p2 }
  0x78   : > { %v1059_v0 = vmov 0.0   ;;  %v1060_v1 = vmov 0   ;;  %vm1061_vm0 = vmmov 0   ;;  %v853_v2 = vld [vmem:[#allocation8 + $0x14] ss:$8 sps:$4 sm:$0xff]   ;;  %v335_v9 = vld [vmem:[%s291_s30] sm:$0xff]  ;;  %v476_v12 = vlaneseq }
  0x79   : > { %1030 = vsyncadd (%p1374_p6), [#allocation9], 4294966784  ;;  %754 = vmatprep.subr.bf16.mxu0 %v1059_v0  ;;  %465 = vmatprep.mubr.bf16.mxu1 %v1060_v1  ;;  %v855_v3 = vld [vmem:[#allocation8 + $0x10] ss:$8 sps:$4 sm:$0xff]   ;;  %v857_v5 = vld [vmem:[#allocation8 + $0x4] ss:$8 sps:$4 sm:$0xff]   ;;  %v336_v11 = vpack.c.bf16 %v335_v9, %v335_v9 }
  0x7a   : > { %758 = vmatprep.mubr.msk.bf16.mxu0 %vm1061_vm0, %v1059_v0  ;;  %445 = vmatprep.subr.bf16.mxu1 %v853_v2  ;;  %v856_v4 = vld [vmem:[#allocation7 + $0x8] sm:$0xff]   ;;  %v859_v6 = vld [vmem:[#allocation8] ss:$8 sps:$4 sm:$0xff]   ;;  %v860_v7 = vld [vmem:[#allocation7] sm:$0xff]   ;;  %vm353_vm1 = vcmask 261120   ;;  %v477_v13 = vshrl.u32 %v476_v12, 7 }
  0x7b   : > { %446 = vmatpush1.bf16.msra.mxu1 %v855_v3  ;;  %755 = vmatpush3.bf16.msra.mxu0 %v856_v4  ;;  %v334_v8 = vld [vmem:[%s282_s19] sm:$0xff]  ;;  %vm547_vm2 = vcmask 1043456   ;;  %vm530_vm3 = vcmask 64512   ;;  %s744_s2 = sshll.u32 %s1119_s25, 7  ;;  %s332_s12 = scalar_lea.vmem [#allocation10], %s1261_s4 }
  0x7c   : > { %447 = vmatprep.subr.bf16.mxu1 %v857_v5  ;;  %756 = vmatprep.subr.bf16.mxu0 %v1059_v0  ;;  %v405_v10 = vpack.c.bf16 %v334_v8, %v334_v8  ;;  %v478_v14 = vsub.s32 0, %v477_v13  ;;  %v474_v15 = vld [vmem:[%s1351_s5] sm:$0x3]  ;;  %v482_v16 = vsub.s32 1, %v477_v13  ;;  %s606_s20 = sshll.u32 %s332_s12, 4  ;;  %s1302_s17 = scalar_lea.hbm %s1352_s6, %s744_s2  ;;  %s1304_s20 = int_to_ptr.vmem [resolvable:$true] %s606_s20 }
  0x7d   : > { %v736_v22 = vld [vmem:[%s1349_s3] ss:$0 sm:$0xff]  ;;  %s593_s7 = scalar_lea.sflag [#allocation4], %s1258_s13  ;;  %s973_s16 = scalar_lea.vmem %s1304_s20, 128 }
  0x7e   : > { %v479_v17 = vrot.slane %v474_v15, %v478_v14  ;;  %v483_v18 = vrot.slane %v474_v15, %v482_v16  ;;  %p974_p12 = scmp.ne.s32.totalorder %s1304_s20, %s973_s16  ;;  %p1375_p3 = scmp.ne.s32.totalorder %s1367_s11, 0 }
  0x7f   : > { %448 = vmatpush1.bf16.msra.mxu1 %v859_v6  ;;  %757 = vmatpush3.bf16.msra.mxu0 %v860_v7  ;;  %s1062_s25 = smov [#allocation10]  }
  0x80   : > { %768 = vmatprep.subr.bf16.mxu1 %v1059_v0  ;;  %762 = vmatprep.subr.bf16.mxu0 %v1059_v0  ;;  %p975_p9 = pnand %p974_p12, %p1375_p3  ;;  %s977_s4 = sshll.u32 %s1062_s25, 4  ;;  %s978_s4 = int_to_ptr.vmem [resolvable:$false] %s977_s4 }
  0x81   : > { %s979_s19 = scalar_lea.vmem %s978_s4, 256  ;;  %p980_p5 = scmp.lt.s32.totalorder %s1304_s20, %s978_s4 }
  0x82   : > { %741 = vmatmul.mubr.msk.bf16.vlgmr.msra.gmra.mxu1 %vm353_vm1, %v405_v10  ;;  %759 = vmatmul.mubr.msk.bf16.vlgmr.msra.gmra.mxu0 %vm353_vm1, %v336_v11  ;;  %p976_p13 = pneg %p975_p9  ;;  %p981_p1 = scmp.lt.s32.totalorder %s979_s19, %s973_s16 }
  0x83   : > { %770 = vmatprep.mubr.msk.bf16.mxu1 %vm1061_vm0, %v1059_v0  ;;  %764 = vmatprep.mubr.msk.bf16.mxu0 %vm1061_vm0, %v1059_v0 }
  0x84   : > { %p982_p7 = por %p981_p1, %p980_p5 }
  0x86   : > { %p983_p4 = pnand %p982_p7, %p976_p13 }
 0x142   : > { %v467_v19 = vpop.f32.mrf.mxu1  ;;  %v391_v21 = vpop.f32.mrf.mxu0 }
 0x143   : > { %v486_v20 = vadd.f32 %v479_v17, %v467_v19  ;;  %v404_v27 = vadd.f32 %v736_v22, %v391_v21 }
 0x144   : > { %v469_v23 = vpop.f32.mrf.mxu1  ;;  %v760_v26 = vpop.f32.mrf.mxu0 }
 0x145   : > { %v489_v24 = vpack.c.bf16 %v486_v20, %v486_v20  ;;  %v487_v25 = vadd.f32 %v483_v18, %v469_v23  ;;  %v488_v34 = vpack.c.bf16 %v404_v27, %v404_v27 }
 0x146   : > { %v471_v28 = vpop.f32.mrf.mxu1  ;;  %v394_v30 = vpop.f32.mrf.mxu0 }
 0x147   : > { %v543_v29 = vpack.c.bf16 %v487_v25, %v487_v25  ;;  %763 = vmatpush3.bf16.xpose.msra.mxu0 %v489_v24 }
 0x148   : > { %v472_v31 = vpop.f32.mrf.mxu1  ;;  %v761_v33 = vpop.f32.mrf.mxu0 }
 0x149   : > { %v549_v32 = vsel %vm547_vm2, %v543_v29, 0 }
 0x14a   : > { %769 = vmatpush3.bf16.msra.mxu1 %v549_v32 }
 0x14e   : > { %765 = vmatmul.mubr.bf16.vlgmr.msra.gmra.mxu0 %v488_v34 }
 0x20e   : > { %v524_v35 = vpop.f32.mrf.mxu0 }
 0x20f   : > { %v531_v36 = vsel %vm530_vm3, %v524_v35, -inf }
 0x210   : > { %532 = vmax.xlane.f32.xlu0 %v531_v36  ;;  %v766_v37 = vpop.f32.mrf.mxu0 }
 0x212   : > { %v527_v38 = vpop.f32.mrf.mxu0 }
 0x214   : > { %v767_v39 = vpop.f32.mrf.mxu0 }
 0x299   : > { %v533_v40 = vpop.xlane.xlu0 %532 }
 0x29a   : > { %v534_v41 = vsub.f32 %v524_v35, %v533_v40 }
 0x29c   : > { %v535_v42 = vmul.f32 1.442695, %v534_v41 }
 0x29e   : > { %861 = vpow2.f32 %v535_v42 }
 0x2ab   : > { %v862_v43 = vpop.eup %861 }
 0x2ac   : > { %v537_v44 = vsel %vm530_vm3, %v862_v43, 0.0 }
 0x2ad   : > { %538 = vadd.xlane.f32.xlu0 %v537_v44 }
 0x336   : > { %v539_v45 = vpop.xlane.xlu0 %538 }
 0x337   : > { %863 = vrcp.f32 %v539_v45 }
 0x344   : > { %v864_v46 = vpop.eup %863 }
 0x345   : > { %v541_v47 = vmul.f32 %v864_v46, %v862_v43 }
 0x347   : > { %v542_v48 = vpack.c.bf16 %v541_v47, %v541_v47 }
 0x349   : > { %771 = vmatmul.mubr.msk.bf16.vlgmr.msra.gmra.mxu1 %vm530_vm3, %v542_v48 }
 0x409   : > { %v585_v49 = vpop.f32.mrf.mxu1 }
 0x40a   : > { %591 = vst.msk [vmem:[%s332_s12] sm:$0xff] %vm353_vm1, %v585_v49 }
 0x40b   : > { %v772_v50 = vpop.f32.mrf.mxu1 }
 0x40c   : > { %986 = shalt.err (!%p983_p4)
}
 0x40d   : > { %s987_s29 = scalar_lea.hbm %s1302_s17, 128  ;;  %s991_s30 = scalar_lea.hbm %s1352_s6, 256 }
 0x40e   : > { %p988_p10 = scmp.ne.s32.totalorder %s1302_s17, %s987_s29  ;;  %p992_p11 = scmp.lt.s32.totalorder %s1302_s17, %s1352_s6 }
 0x40f   : > { %p993_p2 = scmp.lt.s32.totalorder %s991_s30, %s987_s29 }
 0x410   : > { %p989_p0 = pnand %p988_p10, %p1375_p3 }
 0x411   : > { %p994_p6 = por %p993_p2, %p992_p11 }
 0x412   : > { %p990_p8 = pneg %p989_p0 }
 0x414   : > { %p995_p12 = pnand %p994_p6, %p990_p8 }
 0x416   : > { %998 = shalt.err (!%p995_p12)
}
 0x417   : > { %786 = dma.vmem_to_hbm [thread:$0]  (%p1375_p3), %s1304_s20, 128, %s1302_s17, %s593_s7   ;;  %v588_v51 = vpop.f32.mrf.mxu1 }
 0x419   : > { %v773_v52 = vpop.f32.mrf.mxu1 }
 0x41a PF: > { %s618_s14 = sand.u32 1, %s1037_s21   ;;  %p1376_p9 = scmp.ne.s32.totalorder %s1360_s28, 0 }
 0x41b   : > { %p1377_p13 = scmp.ge.s32.totalorder %s1049_s24, 2  ;;  %s619_s8 = scalar_lea.sflag [#allocation4], %s618_s14 }
 0x41d   : > { %p803_p5 = pnand %p1377_p13, %p1376_p9 }
 0x41f   : > { %p804_p1 = pneg %p803_p5 }
 0x421   : > { %1032 = dma.done.wait (%p804_p1), %s619_s8, 128  }
 0x422   : > { %1034 = vsyncadd (%p804_p1), %s619_s8, 4294967168  ;;  %s1378_s11 = sld [smem:[#allocation16_spill]]  ;;  %p23_p3 = scmp.ge.s32.totalorder %s1170_s26, 4  }
 0x423   : > { %s1379_s21 = smov %s1041_s22  ;;  %s1380_s22 = smov %s1045_s23 }
 0x424   : > { %s1382_s24 = smov %s1170_s26  ;;  %25 = sbr.rel (!%p23_p3) target bundleno = 11 (0xb), region = 110 }
 0x428   : > { %s1381_s23 = smov %s1378_s11 }
 0x429   :  { %624 = vsyncpa [#allocation3], 1 }
 0x42a   :  { %626 = vsyncpa [#allocation3 + $0x1], 1 }
 0x42b   :  { %627 = vsyncpa [#allocation6], 1 }
 0x42c   :  { %629 = vsyncpa [#allocation6 + $0x1], 1 }
 0x42d   :  { %630 = vsyncpa [#allocation9], 1 }
 0x42e   :  { %631 = vsyncpa [#allocation4], 1 }
 0x42f   :  { %633 = vsyncpa [#allocation4 + $0x1], 1 }

</bundles_post_ra>
